<compile_context>
chip_gen: v6e
topology: v6e:2x2x1
jax: 0.10.0
libtpu: 0.0.40
codegen_flags: <defaults>
</compile_context>

<pallas_src>
import functools

import jax
import jax.numpy as jnp
from jax.experimental import pallas as pl
from jax.experimental.pallas import tpu as pltpu


def _fused_net_kernel(emb_ref, wih_ref, whh_ref, b_ref, fcw_ref, fcb_ref,
                      out_ref, hs_scr, *, seq_len, hidden, batch_block):
    """Fused LSTM recurrence + FC + log_softmax for one batch block.

    emb_ref : (1, T*bB, E)  time-major-flattened embedded inputs (row = t*bB+b)
    wih_ref : (E, 4H)       input->gates weight  (transposed vs. PyTorch)
    whh_ref : (H, 4H)       hidden->gates weight (transposed vs. PyTorch)
    b_ref   : (1, 4H)       b_ih + b_hh (f32)
    fcw_ref : (H, C)        fc weight (transposed vs. PyTorch)
    fcb_ref : (1, C)        fc bias (f32)
    out_ref : (1, T*bB, C)  log-probabilities (f32)
    hs_scr  : (T*bB, H)     VMEM scratch holding every step's hidden state
    Gate ordering matches PyTorch: [i, f, g, o].
    """
    T, H, bB = seq_len, hidden, batch_block

    # --- Hoisted loads: weights / biases read from VMEM exactly once. -------
    w_hh = whh_ref[...]                    # (H, 4H)
    fc_w = fcw_ref[...]                    # (H, C)
    fc_b = fcb_ref[...]                    # (1, C)  f32
    bias = b_ref[...]                      # (1, 4H) f32
    cdt = w_hh.dtype                       # matmul operand dtype (bf16 or f32)

    # --- One big MXU matmul: input projection for ALL timesteps at once. ----
    x_all = emb_ref[0]                     # (T*bB, E)
    xproj = jnp.dot(x_all, wih_ref[...],
                    preferred_element_type=jnp.float32) + bias   # (T*bB,4H) f32

    # --- Recurrence: only h_prev @ W_hh remains on the serial path. ---------
    # Fully unrolled (T is small & static) so the scheduler can overlap MXU
    # push/drain with EUP sigmoid/tanh and the hs store of adjacent steps.
    # Gate math stays in f32 (v5e has no bf16 VPU/EUP path).
    h_lp = jnp.zeros((bB, H), cdt)         # low-precision h fed to the MXU
    c = jnp.zeros((bB, H), jnp.float32)
    for t in range(T):
        gates = xproj[t * bB:(t + 1) * bB, :] + jnp.dot(
            h_lp, w_hh, preferred_element_type=jnp.float32)      # (bB,4H) f32
        i_g = jax.nn.sigmoid(gates[:, 0 * H:1 * H])
        f_g = jax.nn.sigmoid(gates[:, 1 * H:2 * H])
        g_g = jnp.tanh(gates[:, 2 * H:3 * H])
        o_g = jax.nn.sigmoid(gates[:, 3 * H:4 * H])
        c = f_g * c + i_g * g_g
        h = o_g * jnp.tanh(c)
        h_lp = h.astype(cdt)
        hs_scr[t * bB:(t + 1) * bB, :] = h_lp

    # --- Fused FC + log_softmax over every timestep: one final MXU matmul. --
    logits = jnp.dot(hs_scr[...], fc_w,
                     preferred_element_type=jnp.float32) + fc_b  # (T*bB,C) f32
    m = jnp.max(logits, axis=1, keepdims=True)
    z = logits - m
    lse = jnp.log(jnp.sum(jnp.exp(z), axis=1, keepdims=True))
    out_ref[0] = z - lse


def fused_net_pallas(emb_blk, w_ih_t, w_hh_t, b_lstm, fc_w_t, fc_b, *,
                     seq_len, batch_block):
    nb, rows, E = emb_blk.shape
    H = w_hh_t.shape[0]
    C = fc_w_t.shape[1]
    kernel = functools.partial(_fused_net_kernel, seq_len=seq_len, hidden=H,
                               batch_block=batch_block)
    # NOTE: for long sequences / big batches, stream the (T*bB, E) slab over a
    # second ("arbitrary") grid axis instead of keeping it fully VMEM-resident
    # (v7x only has 64 MiB VMEM).  At these sizes full residency is optimal.
    return pl.pallas_call(
        kernel,
        out_shape=jax.ShapeDtypeStruct((nb, rows, C), jnp.float32),
        grid_spec=pltpu.PrefetchScalarGridSpec(
            num_scalar_prefetch=0,
            grid=(nb,),
            in_specs=[
                pl.BlockSpec((1, rows, E), lambda b: (b, 0, 0)),
                pl.BlockSpec((E, 4 * H), lambda b: (0, 0)),
                pl.BlockSpec((H, 4 * H), lambda b: (0, 0)),
                pl.BlockSpec((1, 4 * H), lambda b: (0, 0)),
                pl.BlockSpec((H, C), lambda b: (0, 0)),
                pl.BlockSpec((1, C), lambda b: (0, 0)),
            ],
            out_specs=pl.BlockSpec((1, rows, C), lambda b: (b, 0, 0)),
            scratch_shapes=[pltpu.VMEM((rows, H), w_hh_t.dtype)],
        ),
        compiler_params=pltpu.CompilerParams(
            # Batch blocks are independent -> megacore (v7x) can shard them.
            dimension_semantics=("parallel",),
        ),
    )(emb_blk, w_ih_t, w_hh_t, b_lstm, fc_w_t, fc_b)


def net_forward(tokens, params, *, batch_block=None):
    """Forward pass of Net: embedding -> LSTM -> FC -> log_softmax.

    tokens: (B, T) int32 token ids.  Returns (B*T, C) f32 log-probabilities,
    rows ordered (b, t) exactly like PyTorch batch_first `.view(-1, H)`.
    """
    emb_table = params["embedding"]            # (V, E)
    w_ih_t, w_hh_t, b_lstm = params["lstm"]    # (E,4H), (H,4H), (1,4H)
    fc_w_t, fc_b = params["fc"]                # (H, C), (1, C)

    B, T = tokens.shape
    E = emb_table.shape[1]
    C = fc_w_t.shape[1]

    if batch_block is None:
        # Default: two parallel batch tiles so v7x megacore uses both cores.
        batch_block = B if B < 2 else -(-B // 2)
    if B % batch_block != 0:
        batch_block = B                        # keep blocks exact (no padding)
    nb = B // batch_block

    # Embedding lookup (gather) straight into time-major (T, B, E): the
    # transpose happens on the tiny int token matrix, not on activations.
    # TODO(synk): pull the gather in-kernel (VMEM table + SMEM token ids) once
    # dynamic-gather lowering is guaranteed for this layout.
    emb_tm = jnp.take(emb_table, tokens.T, axis=0)             # (T, B, E)

    # Regroup into per-batch-block, time-major-flattened 2-D slabs so the
    # kernel only ever sees 2-D tiles (row = t*bB + b_local).
    emb_blk = (emb_tm.reshape(T, nb, batch_block, E)
               .transpose(1, 0, 2, 3)
               .reshape(nb, T * batch_block, E))

    out_blk = fused_net_pallas(emb_blk, w_ih_t, w_hh_t, b_lstm, fc_w_t, fc_b,
                               seq_len=T, batch_block=batch_block)

    # Tiny reorder of the output back to PyTorch's (b, t) row order.
    out = (out_blk.reshape(nb, T, batch_block, C)
           .transpose(0, 2, 1, 3)
           .reshape(B * T, C))
    return out


def init_params(key, vocab_size, embedding_dim, lstm_hidden_dim, number_of_tags,
                param_dtype=jnp.bfloat16):
    """PyTorch stores weight_ih as (4H,E), weight_hh as (4H,H), fc.weight as
    (C,H); we keep the transposed layouts so the kernel does x @ W directly.
    Matmul operands are bf16 (v6e/v7x MXU peak, f32 accumulation); biases f32.
    """
    k = jax.random.split(key, 7)
    scale = 0.1
    embedding = (scale * jax.random.normal(
        k[0], (vocab_size, embedding_dim))).astype(param_dtype)
    w_ih_t = (scale * jax.random.normal(
        k[1], (embedding_dim, 4 * lstm_hidden_dim))).astype(param_dtype)
    w_hh_t = (scale * jax.random.normal(
        k[2], (lstm_hidden_dim, 4 * lstm_hidden_dim))).astype(param_dtype)
    b_ih = scale * jax.random.normal(k[3], (4 * lstm_hidden_dim,))
    b_hh = scale * jax.random.normal(k[4], (4 * lstm_hidden_dim,))
    b_lstm = (b_ih + b_hh).reshape(1, 4 * lstm_hidden_dim).astype(jnp.float32)
    fc_w_t = (scale * jax.random.normal(
        k[5], (lstm_hidden_dim, number_of_tags))).astype(param_dtype)
    fc_b = (scale * jax.random.normal(
        k[6], (1, number_of_tags))).astype(jnp.float32)
    return {"embedding": embedding, "lstm": (w_ih_t, w_hh_t, b_lstm),
            "fc": (fc_w_t, fc_b)}


def reference_forward(tokens, params):
    """Pure-JAX f32 reference mirroring the PyTorch module's forward."""
    emb_table = params["embedding"].astype(jnp.float32)
    w_ih_t, w_hh_t, b_lstm = [p.astype(jnp.float32) for p in params["lstm"]]
    fc_w_t, fc_b = [p.astype(jnp.float32) for p in params["fc"]]
    B, T = tokens.shape
    H = w_hh_t.shape[0]
    emb = jnp.take(emb_table, tokens, axis=0)          # (B, T, E)
    h = jnp.zeros((B, H), jnp.float32)
    c = jnp.zeros((B, H), jnp.float32)
    hs = []
    for t in range(T):
        gates = emb[:, t, :] @ w_ih_t + h @ w_hh_t + b_lstm
        i_g = jax.nn.sigmoid(gates[:, 0 * H:1 * H])
        f_g = jax.nn.sigmoid(gates[:, 1 * H:2 * H])
        g_g = jnp.tanh(gates[:, 2 * H:3 * H])
        o_g = jax.nn.sigmoid(gates[:, 3 * H:4 * H])
        c = f_g * c + i_g * g_g
        h = o_g * jnp.tanh(c)
        hs.append(h)
    hs = jnp.stack(hs, axis=1).reshape(B * T, H)       # batch_first view order
    logits = hs @ fc_w_t + fc_b
    return jax.nn.log_softmax(logits, axis=1)


if __name__ == "__main__":
    # Small synthetic config consistent with the module's forward().
    vocab_size = 20
    embedding_dim = 32
    lstm_hidden_dim = 32
    number_of_tags = 8
    batch, seq_len = 2, 8

    key = jax.random.PRNGKey(0)
    pkey, tkey = jax.random.split(key)
    params = init_params(pkey, vocab_size, embedding_dim,
                         lstm_hidden_dim, number_of_tags)
    tokens = jax.random.randint(tkey, (batch, seq_len), 0, vocab_size,
                                dtype=jnp.int32)

    fwd = jax.jit(net_forward)
    out = jax.block_until_ready(fwd(tokens, params))   # (B*T, C)

    assert out.shape == (batch * seq_len, number_of_tags)
    assert out.dtype == jnp.float32
    # log_softmax rows should sum (in prob space) to ~1.
    assert jnp.allclose(jnp.sum(jnp.exp(out), axis=1), 1.0, atol=1e-4)
    # Cross-check against the pure-JAX f32 reference (bf16 matmul tolerance).
    ref = reference_forward(tokens, params)
    assert jnp.allclose(out, ref, atol=5e-2), float(jnp.max(jnp.abs(out - ref)))
    print("KERNEL_OK")
</pallas_src>

<mosaic_0001>
module attributes {stable_mosaic.version = 11 : i64} {
  func.func @_fused_net_kernel(%arg0: i32, %arg1: memref<1x8x32xbf16, #tpu.memory_space<vmem>>, %arg2: memref<32x128xbf16, #tpu.memory_space<vmem>>, %arg3: memref<32x128xbf16, #tpu.memory_space<vmem>>, %arg4: memref<1x128xf32, #tpu.memory_space<vmem>>, %arg5: memref<32x8xbf16, #tpu.memory_space<vmem>>, %arg6: memref<1x8xf32, #tpu.memory_space<vmem>>, %arg7: memref<1x8x8xf32, #tpu.memory_space<vmem>>, %arg8: memref<8x32xbf16, #tpu.memory_space<vmem>>) attributes {dimension_semantics = [#tpu.dimension_semantics<parallel>], iteration_bounds = array<i64: 2>, scalar_prefetch = 0 : i64, scratch_operands = 1 : i64, tpu.core_type = #tpu.core_type<tc>, window_params = [{transform_indices = @transform_0, window_bounds = array<i64: 1, 8, 32>}, {pipeline_mode = #tpu.pipeline_mode<synchronous>, transform_indices = @transform_1, window_bounds = array<i64: 32, 128>}, {pipeline_mode = #tpu.pipeline_mode<synchronous>, transform_indices = @transform_2, window_bounds = array<i64: 32, 128>}, {pipeline_mode = #tpu.pipeline_mode<synchronous>, transform_indices = @transform_3, window_bounds = array<i64: 1, 128>}, {pipeline_mode = #tpu.pipeline_mode<synchronous>, transform_indices = @transform_4, window_bounds = array<i64: 32, 8>}, {pipeline_mode = #tpu.pipeline_mode<synchronous>, transform_indices = @transform_5, window_bounds = array<i64: 1, 8>}, {transform_indices = @transform_6, window_bounds = array<i64: 1, 8, 8>}]} {
    %c0 = arith.constant 0 : index
    %c0_0 = arith.constant 0 : index
    %0 = vector.load %arg3[%c0, %c0_0] : memref<32x128xbf16, #tpu.memory_space<vmem>>, vector<32x128xbf16>
    %c0_1 = arith.constant 0 : index
    %c0_2 = arith.constant 0 : index
    %1 = vector.load %arg5[%c0_1, %c0_2] : memref<32x8xbf16, #tpu.memory_space<vmem>>, vector<32x8xbf16>
    %c0_3 = arith.constant 0 : index
    %c0_4 = arith.constant 0 : index
    %2 = vector.load %arg6[%c0_3, %c0_4] : memref<1x8xf32, #tpu.memory_space<vmem>>, vector<1x8xf32>
    %c0_5 = arith.constant 0 : index
    %c0_6 = arith.constant 0 : index
    %3 = vector.load %arg4[%c0_5, %c0_6] : memref<1x128xf32, #tpu.memory_space<vmem>>, vector<1x128xf32>
    %c0_7 = arith.constant 0 : index
    %c0_8 = arith.constant 0 : index
    %c0_9 = arith.constant 0 : index
    %4 = vector.load %arg1[%c0_7, %c0_8, %c0_9] : memref<1x8x32xbf16, #tpu.memory_space<vmem>>, vector<1x8x32xbf16>
    %5 = vector.shape_cast %4 : vector<1x8x32xbf16> to vector<8x32xbf16>
    %c0_10 = arith.constant 0 : index
    %c0_11 = arith.constant 0 : index
    %6 = vector.load %arg2[%c0_10, %c0_11] : memref<32x128xbf16, #tpu.memory_space<vmem>>, vector<32x128xbf16>
    %cst = arith.constant dense<0.000000e+00> : vector<8x128xf32>
    %7 = tpu.matmul %5, %6, %cst {dimension_numbers = #tpu.dot_dimension_numbers<[1], [0], [0], [1], [0, 0, 1, 1], [], []>} : vector<8x32xbf16>, vector<32x128xbf16>, vector<8x128xf32> -> vector<8x128xf32>
    %8 = vector.broadcast %3 : vector<1x128xf32> to vector<8x128xf32>
    %9 = arith.addf %7, %8 : vector<8x128xf32>
    %cst_12 = arith.constant 0.000000e+00 : bf16
    %10 = vector.broadcast %cst_12 : bf16 to vector<1x32xbf16>
    %cst_13 = arith.constant 0.000000e+00 : f32
    %11 = vector.broadcast %cst_13 : f32 to vector<1x32xf32>
    %12 = vector.extract_strided_slice %9 {offsets = [0, 0], sizes = [1, 128], strides = [1, 1]} : vector<8x128xf32> to vector<1x128xf32>
    %cst_14 = arith.constant dense<0.000000e+00> : vector<1x128xf32>
    %13 = tpu.matmul %10, %0, %cst_14 {dimension_numbers = #tpu.dot_dimension_numbers<[1], [0], [0], [1], [0, 0, 1, 1], [], []>} : vector<1x32xbf16>, vector<32x128xbf16>, vector<1x128xf32> -> vector<1x128xf32>
    %14 = arith.addf %12, %13 : vector<1x128xf32>
    %15 = vector.extract_strided_slice %14 {offsets = [0, 0], sizes = [1, 32], strides = [1, 1]} : vector<1x128xf32> to vector<1x32xf32>
    %16 = arith.negf %15 : vector<1x32xf32>
    %17 = math.exp %16 : vector<1x32xf32>
    %cst_15 = arith.constant 1.000000e+00 : f32
    %18 = vector.broadcast %cst_15 : f32 to vector<1x32xf32>
    %19 = arith.addf %18, %17 : vector<1x32xf32>
    %20 = arith.divf %18, %19 : vector<1x32xf32>
    %21 = vector.extract_strided_slice %14 {offsets = [0, 32], sizes = [1, 32], strides = [1, 1]} : vector<1x128xf32> to vector<1x32xf32>
    %22 = arith.negf %21 : vector<1x32xf32>
    %23 = math.exp %22 : vector<1x32xf32>
    %cst_16 = arith.constant 1.000000e+00 : f32
    %24 = vector.broadcast %cst_16 : f32 to vector<1x32xf32>
    %25 = arith.addf %24, %23 : vector<1x32xf32>
    %26 = arith.divf %24, %25 : vector<1x32xf32>
    %27 = vector.extract_strided_slice %14 {offsets = [0, 64], sizes = [1, 32], strides = [1, 1]} : vector<1x128xf32> to vector<1x32xf32>
    %28 = math.tanh %27 : vector<1x32xf32>
    %29 = vector.extract_strided_slice %14 {offsets = [0, 96], sizes = [1, 32], strides = [1, 1]} : vector<1x128xf32> to vector<1x32xf32>
    %30 = arith.negf %29 : vector<1x32xf32>
    %31 = math.exp %30 : vector<1x32xf32>
    %cst_17 = arith.constant 1.000000e+00 : f32
    %32 = vector.broadcast %cst_17 : f32 to vector<1x32xf32>
    %33 = arith.addf %32, %31 : vector<1x32xf32>
    %34 = arith.divf %32, %33 : vector<1x32xf32>
    %35 = arith.mulf %26, %11 : vector<1x32xf32>
    %36 = arith.mulf %20, %28 : vector<1x32xf32>
    %37 = arith.addf %35, %36 : vector<1x32xf32>
    %38 = math.tanh %37 : vector<1x32xf32>
    %39 = arith.mulf %34, %38 : vector<1x32xf32>
    %40 = arith.truncf %39 : vector<1x32xf32> to vector<1x32xbf16>
    %c0_18 = arith.constant 0 : index
    %c0_19 = arith.constant 0 : index
    %41 = vector.load %arg8[%c0_18, %c0_19] : memref<8x32xbf16, #tpu.memory_space<vmem>>, vector<1x32xbf16>
    tpu.vector_store %arg8[%c0_18, %c0_19], %40 {strides = array<i32>} : memref<8x32xbf16, #tpu.memory_space<vmem>>, vector<1x32xbf16>,
    %42 = vector.extract_strided_slice %9 {offsets = [1, 0], sizes = [1, 128], strides = [1, 1]} : vector<8x128xf32> to vector<1x128xf32>
    %cst_20 = arith.constant dense<0.000000e+00> : vector<1x128xf32>
    %43 = tpu.matmul %40, %0, %cst_20 {dimension_numbers = #tpu.dot_dimension_numbers<[1], [0], [0], [1], [0, 0, 1, 1], [], []>} : vector<1x32xbf16>, vector<32x128xbf16>, vector<1x128xf32> -> vector<1x128xf32>
    %44 = arith.addf %42, %43 : vector<1x128xf32>
    %45 = vector.extract_strided_slice %44 {offsets = [0, 0], sizes = [1, 32], strides = [1, 1]} : vector<1x128xf32> to vector<1x32xf32>
    %46 = arith.negf %45 : vector<1x32xf32>
    %47 = math.exp %46 : vector<1x32xf32>
    %cst_21 = arith.constant 1.000000e+00 : f32
    %48 = vector.broadcast %cst_21 : f32 to vector<1x32xf32>
    %49 = arith.addf %48, %47 : vector<1x32xf32>
    %50 = arith.divf %48, %49 : vector<1x32xf32>
    %51 = vector.extract_strided_slice %44 {offsets = [0, 32], sizes = [1, 32], strides = [1, 1]} : vector<1x128xf32> to vector<1x32xf32>
    %52 = arith.negf %51 : vector<1x32xf32>
    %53 = math.exp %52 : vector<1x32xf32>
    %cst_22 = arith.constant 1.000000e+00 : f32
    %54 = vector.broadcast %cst_22 : f32 to vector<1x32xf32>
    %55 = arith.addf %54, %53 : vector<1x32xf32>
    %56 = arith.divf %54, %55 : vector<1x32xf32>
    %57 = vector.extract_strided_slice %44 {offsets = [0, 64], sizes = [1, 32], strides = [1, 1]} : vector<1x128xf32> to vector<1x32xf32>
    %58 = math.tanh %57 : vector<1x32xf32>
    %59 = vector.extract_strided_slice %44 {offsets = [0, 96], sizes = [1, 32], strides = [1, 1]} : vector<1x128xf32> to vector<1x32xf32>
    %60 = arith.negf %59 : vector<1x32xf32>
    %61 = math.exp %60 : vector<1x32xf32>
    %cst_23 = arith.constant 1.000000e+00 : f32
    %62 = vector.broadcast %cst_23 : f32 to vector<1x32xf32>
    %63 = arith.addf %62, %61 : vector<1x32xf32>
    %64 = arith.divf %62, %63 : vector<1x32xf32>
    %65 = arith.mulf %56, %37 : vector<1x32xf32>
    %66 = arith.mulf %50, %58 : vector<1x32xf32>
    %67 = arith.addf %65, %66 : vector<1x32xf32>
    %68 = math.tanh %67 : vector<1x32xf32>
    %69 = arith.mulf %64, %68 : vector<1x32xf32>
    %70 = arith.truncf %69 : vector<1x32xf32> to vector<1x32xbf16>
    %c1 = arith.constant 1 : index
    %c0_24 = arith.constant 0 : index
    %71 = vector.load %arg8[%c1, %c0_24] : memref<8x32xbf16, #tpu.memory_space<vmem>>, vector<1x32xbf16>
    tpu.vector_store %arg8[%c1, %c0_24], %70 {strides = array<i32>} : memref<8x32xbf16, #tpu.memory_space<vmem>>, vector<1x32xbf16>,
    %72 = vector.extract_strided_slice %9 {offsets = [2, 0], sizes = [1, 128], strides = [1, 1]} : vector<8x128xf32> to vector<1x128xf32>
    %cst_25 = arith.constant dense<0.000000e+00> : vector<1x128xf32>
    %73 = tpu.matmul %70, %0, %cst_25 {dimension_numbers = #tpu.dot_dimension_numbers<[1], [0], [0], [1], [0, 0, 1, 1], [], []>} : vector<1x32xbf16>, vector<32x128xbf16>, vector<1x128xf32> -> vector<1x128xf32>
    %74 = arith.addf %72, %73 : vector<1x128xf32>
    %75 = vector.extract_strided_slice %74 {offsets = [0, 0], sizes = [1, 32], strides = [1, 1]} : vector<1x128xf32> to vector<1x32xf32>
    %76 = arith.negf %75 : vector<1x32xf32>
    %77 = math.exp %76 : vector<1x32xf32>
    %cst_26 = arith.constant 1.000000e+00 : f32
    %78 = vector.broadcast %cst_26 : f32 to vector<1x32xf32>
    %79 = arith.addf %78, %77 : vector<1x32xf32>
    %80 = arith.divf %78, %79 : vector<1x32xf32>
    %81 = vector.extract_strided_slice %74 {offsets = [0, 32], sizes = [1, 32], strides = [1, 1]} : vector<1x128xf32> to vector<1x32xf32>
    %82 = arith.negf %81 : vector<1x32xf32>
    %83 = math.exp %82 : vector<1x32xf32>
    %cst_27 = arith.constant 1.000000e+00 : f32
    %84 = vector.broadcast %cst_27 : f32 to vector<1x32xf32>
    %85 = arith.addf %84, %83 : vector<1x32xf32>
    %86 = arith.divf %84, %85 : vector<1x32xf32>
    %87 = vector.extract_strided_slice %74 {offsets = [0, 64], sizes = [1, 32], strides = [1, 1]} : vector<1x128xf32> to vector<1x32xf32>
    %88 = math.tanh %87 : vector<1x32xf32>
    %89 = vector.extract_strided_slice %74 {offsets = [0, 96], sizes = [1, 32], strides = [1, 1]} : vector<1x128xf32> to vector<1x32xf32>
    %90 = arith.negf %89 : vector<1x32xf32>
    %91 = math.exp %90 : vector<1x32xf32>
    %cst_28 = arith.constant 1.000000e+00 : f32
    %92 = vector.broadcast %cst_28 : f32 to vector<1x32xf32>
    %93 = arith.addf %92, %91 : vector<1x32xf32>
    %94 = arith.divf %92, %93 : vector<1x32xf32>
    %95 = arith.mulf %86, %67 : vector<1x32xf32>
    %96 = arith.mulf %80, %88 : vector<1x32xf32>
    %97 = arith.addf %95, %96 : vector<1x32xf32>
    %98 = math.tanh %97 : vector<1x32xf32>
    %99 = arith.mulf %94, %98 : vector<1x32xf32>
    %100 = arith.truncf %99 : vector<1x32xf32> to vector<1x32xbf16>
    %c2 = arith.constant 2 : index
    %c0_29 = arith.constant 0 : index
    %101 = vector.load %arg8[%c2, %c0_29] : memref<8x32xbf16, #tpu.memory_space<vmem>>, vector<1x32xbf16>
    tpu.vector_store %arg8[%c2, %c0_29], %100 {strides = array<i32>} : memref<8x32xbf16, #tpu.memory_space<vmem>>, vector<1x32xbf16>,
    %102 = vector.extract_strided_slice %9 {offsets = [3, 0], sizes = [1, 128], strides = [1, 1]} : vector<8x128xf32> to vector<1x128xf32>
    %cst_30 = arith.constant dense<0.000000e+00> : vector<1x128xf32>
    %103 = tpu.matmul %100, %0, %cst_30 {dimension_numbers = #tpu.dot_dimension_numbers<[1], [0], [0], [1], [0, 0, 1, 1], [], []>} : vector<1x32xbf16>, vector<32x128xbf16>, vector<1x128xf32> -> vector<1x128xf32>
    %104 = arith.addf %102, %103 : vector<1x128xf32>
    %105 = vector.extract_strided_slice %104 {offsets = [0, 0], sizes = [1, 32], strides = [1, 1]} : vector<1x128xf32> to vector<1x32xf32>
    %106 = arith.negf %105 : vector<1x32xf32>
    %107 = math.exp %106 : vector<1x32xf32>
    %cst_31 = arith.constant 1.000000e+00 : f32
    %108 = vector.broadcast %cst_31 : f32 to vector<1x32xf32>
    %109 = arith.addf %108, %107 : vector<1x32xf32>
    %110 = arith.divf %108, %109 : vector<1x32xf32>
    %111 = vector.extract_strided_slice %104 {offsets = [0, 32], sizes = [1, 32], strides = [1, 1]} : vector<1x128xf32> to vector<1x32xf32>
    %112 = arith.negf %111 : vector<1x32xf32>
    %113 = math.exp %112 : vector<1x32xf32>
    %cst_32 = arith.constant 1.000000e+00 : f32
    %114 = vector.broadcast %cst_32 : f32 to vector<1x32xf32>
    %115 = arith.addf %114, %113 : vector<1x32xf32>
    %116 = arith.divf %114, %115 : vector<1x32xf32>
    %117 = vector.extract_strided_slice %104 {offsets = [0, 64], sizes = [1, 32], strides = [1, 1]} : vector<1x128xf32> to vector<1x32xf32>
    %118 = math.tanh %117 : vector<1x32xf32>
    %119 = vector.extract_strided_slice %104 {offsets = [0, 96], sizes = [1, 32], strides = [1, 1]} : vector<1x128xf32> to vector<1x32xf32>
    %120 = arith.negf %119 : vector<1x32xf32>
    %121 = math.exp %120 : vector<1x32xf32>
    %cst_33 = arith.constant 1.000000e+00 : f32
    %122 = vector.broadcast %cst_33 : f32 to vector<1x32xf32>
    %123 = arith.addf %122, %121 : vector<1x32xf32>
    %124 = arith.divf %122, %123 : vector<1x32xf32>
    %125 = arith.mulf %116, %97 : vector<1x32xf32>
    %126 = arith.mulf %110, %118 : vector<1x32xf32>
    %127 = arith.addf %125, %126 : vector<1x32xf32>
    %128 = math.tanh %127 : vector<1x32xf32>
    %129 = arith.mulf %124, %128 : vector<1x32xf32>
    %130 = arith.truncf %129 : vector<1x32xf32> to vector<1x32xbf16>
    %c3 = arith.constant 3 : index
    %c0_34 = arith.constant 0 : index
    %131 = vector.load %arg8[%c3, %c0_34] : memref<8x32xbf16, #tpu.memory_space<vmem>>, vector<1x32xbf16>
    tpu.vector_store %arg8[%c3, %c0_34], %130 {strides = array<i32>} : memref<8x32xbf16, #tpu.memory_space<vmem>>, vector<1x32xbf16>,
    %132 = vector.extract_strided_slice %9 {offsets = [4, 0], sizes = [1, 128], strides = [1, 1]} : vector<8x128xf32> to vector<1x128xf32>
    %cst_35 = arith.constant dense<0.000000e+00> : vector<1x128xf32>
    %133 = tpu.matmul %130, %0, %cst_35 {dimension_numbers = #tpu.dot_dimension_numbers<[1], [0], [0], [1], [0, 0, 1, 1], [], []>} : vector<1x32xbf16>, vector<32x128xbf16>, vector<1x128xf32> -> vector<1x128xf32>
    %134 = arith.addf %132, %133 : vector<1x128xf32>
    %135 = vector.extract_strided_slice %134 {offsets = [0, 0], sizes = [1, 32], strides = [1, 1]} : vector<1x128xf32> to vector<1x32xf32>
    %136 = arith.negf %135 : vector<1x32xf32>
    %137 = math.exp %136 : vector<1x32xf32>
    %cst_36 = arith.constant 1.000000e+00 : f32
    %138 = vector.broadcast %cst_36 : f32 to vector<1x32xf32>
    %139 = arith.addf %138, %137 : vector<1x32xf32>
    %140 = arith.divf %138, %139 : vector<1x32xf32>
    %141 = vector.extract_strided_slice %134 {offsets = [0, 32], sizes = [1, 32], strides = [1, 1]} : vector<1x128xf32> to vector<1x32xf32>
    %142 = arith.negf %141 : vector<1x32xf32>
    %143 = math.exp %142 : vector<1x32xf32>
    %cst_37 = arith.constant 1.000000e+00 : f32
    %144 = vector.broadcast %cst_37 : f32 to vector<1x32xf32>
    %145 = arith.addf %144, %143 : vector<1x32xf32>
    %146 = arith.divf %144, %145 : vector<1x32xf32>
    %147 = vector.extract_strided_slice %134 {offsets = [0, 64], sizes = [1, 32], strides = [1, 1]} : vector<1x128xf32> to vector<1x32xf32>
    %148 = math.tanh %147 : vector<1x32xf32>
    %149 = vector.extract_strided_slice %134 {offsets = [0, 96], sizes = [1, 32], strides = [1, 1]} : vector<1x128xf32> to vector<1x32xf32>
    %150 = arith.negf %149 : vector<1x32xf32>
    %151 = math.exp %150 : vector<1x32xf32>
    %cst_38 = arith.constant 1.000000e+00 : f32
    %152 = vector.broadcast %cst_38 : f32 to vector<1x32xf32>
    %153 = arith.addf %152, %151 : vector<1x32xf32>
    %154 = arith.divf %152, %153 : vector<1x32xf32>
    %155 = arith.mulf %146, %127 : vector<1x32xf32>
    %156 = arith.mulf %140, %148 : vector<1x32xf32>
    %157 = arith.addf %155, %156 : vector<1x32xf32>
    %158 = math.tanh %157 : vector<1x32xf32>
    %159 = arith.mulf %154, %158 : vector<1x32xf32>
    %160 = arith.truncf %159 : vector<1x32xf32> to vector<1x32xbf16>
    %c4 = arith.constant 4 : index
    %c0_39 = arith.constant 0 : index
    %161 = vector.load %arg8[%c4, %c0_39] : memref<8x32xbf16, #tpu.memory_space<vmem>>, vector<1x32xbf16>
    tpu.vector_store %arg8[%c4, %c0_39], %160 {strides = array<i32>} : memref<8x32xbf16, #tpu.memory_space<vmem>>, vector<1x32xbf16>,
    %162 = vector.extract_strided_slice %9 {offsets = [5, 0], sizes = [1, 128], strides = [1, 1]} : vector<8x128xf32> to vector<1x128xf32>
    %cst_40 = arith.constant dense<0.000000e+00> : vector<1x128xf32>
    %163 = tpu.matmul %160, %0, %cst_40 {dimension_numbers = #tpu.dot_dimension_numbers<[1], [0], [0], [1], [0, 0, 1, 1], [], []>} : vector<1x32xbf16>, vector<32x128xbf16>, vector<1x128xf32> -> vector<1x128xf32>
    %164 = arith.addf %162, %163 : vector<1x128xf32>
    %165 = vector.extract_strided_slice %164 {offsets = [0, 0], sizes = [1, 32], strides = [1, 1]} : vector<1x128xf32> to vector<1x32xf32>
    %166 = arith.negf %165 : vector<1x32xf32>
    %167 = math.exp %166 : vector<1x32xf32>
    %cst_41 = arith.constant 1.000000e+00 : f32
    %168 = vector.broadcast %cst_41 : f32 to vector<1x32xf32>
    %169 = arith.addf %168, %167 : vector<1x32xf32>
    %170 = arith.divf %168, %169 : vector<1x32xf32>
    %171 = vector.extract_strided_slice %164 {offsets = [0, 32], sizes = [1, 32], strides = [1, 1]} : vector<1x128xf32> to vector<1x32xf32>
    %172 = arith.negf %171 : vector<1x32xf32>
    %173 = math.exp %172 : vector<1x32xf32>
    %cst_42 = arith.constant 1.000000e+00 : f32
    %174 = vector.broadcast %cst_42 : f32 to vector<1x32xf32>
    %175 = arith.addf %174, %173 : vector<1x32xf32>
    %176 = arith.divf %174, %175 : vector<1x32xf32>
    %177 = vector.extract_strided_slice %164 {offsets = [0, 64], sizes = [1, 32], strides = [1, 1]} : vector<1x128xf32> to vector<1x32xf32>
    %178 = math.tanh %177 : vector<1x32xf32>
    %179 = vector.extract_strided_slice %164 {offsets = [0, 96], sizes = [1, 32], strides = [1, 1]} : vector<1x128xf32> to vector<1x32xf32>
    %180 = arith.negf %179 : vector<1x32xf32>
    %181 = math.exp %180 : vector<1x32xf32>
    %cst_43 = arith.constant 1.000000e+00 : f32
    %182 = vector.broadcast %cst_43 : f32 to vector<1x32xf32>
    %183 = arith.addf %182, %181 : vector<1x32xf32>
    %184 = arith.divf %182, %183 : vector<1x32xf32>
    %185 = arith.mulf %176, %157 : vector<1x32xf32>
    %186 = arith.mulf %170, %178 : vector<1x32xf32>
    %187 = arith.addf %185, %186 : vector<1x32xf32>
    %188 = math.tanh %187 : vector<1x32xf32>
    %189 = arith.mulf %184, %188 : vector<1x32xf32>
    %190 = arith.truncf %189 : vector<1x32xf32> to vector<1x32xbf16>
    %c5 = arith.constant 5 : index
    %c0_44 = arith.constant 0 : index
    %191 = vector.load %arg8[%c5, %c0_44] : memref<8x32xbf16, #tpu.memory_space<vmem>>, vector<1x32xbf16>
    tpu.vector_store %arg8[%c5, %c0_44], %190 {strides = array<i32>} : memref<8x32xbf16, #tpu.memory_space<vmem>>, vector<1x32xbf16>,
    %192 = vector.extract_strided_slice %9 {offsets = [6, 0], sizes = [1, 128], strides = [1, 1]} : vector<8x128xf32> to vector<1x128xf32>
    %cst_45 = arith.constant dense<0.000000e+00> : vector<1x128xf32>
    %193 = tpu.matmul %190, %0, %cst_45 {dimension_numbers = #tpu.dot_dimension_numbers<[1], [0], [0], [1], [0, 0, 1, 1], [], []>} : vector<1x32xbf16>, vector<32x128xbf16>, vector<1x128xf32> -> vector<1x128xf32>
    %194 = arith.addf %192, %193 : vector<1x128xf32>
    %195 = vector.extract_strided_slice %194 {offsets = [0, 0], sizes = [1, 32], strides = [1, 1]} : vector<1x128xf32> to vector<1x32xf32>
    %196 = arith.negf %195 : vector<1x32xf32>
    %197 = math.exp %196 : vector<1x32xf32>
    %cst_46 = arith.constant 1.000000e+00 : f32
    %198 = vector.broadcast %cst_46 : f32 to vector<1x32xf32>
    %199 = arith.addf %198, %197 : vector<1x32xf32>
    %200 = arith.divf %198, %199 : vector<1x32xf32>
    %201 = vector.extract_strided_slice %194 {offsets = [0, 32], sizes = [1, 32], strides = [1, 1]} : vector<1x128xf32> to vector<1x32xf32>
    %202 = arith.negf %201 : vector<1x32xf32>
    %203 = math.exp %202 : vector<1x32xf32>
    %cst_47 = arith.constant 1.000000e+00 : f32
    %204 = vector.broadcast %cst_47 : f32 to vector<1x32xf32>
    %205 = arith.addf %204, %203 : vector<1x32xf32>
    %206 = arith.divf %204, %205 : vector<1x32xf32>
    %207 = vector.extract_strided_slice %194 {offsets = [0, 64], sizes = [1, 32], strides = [1, 1]} : vector<1x128xf32> to vector<1x32xf32>
    %208 = math.tanh %207 : vector<1x32xf32>
    %209 = vector.extract_strided_slice %194 {offsets = [0, 96], sizes = [1, 32], strides = [1, 1]} : vector<1x128xf32> to vector<1x32xf32>
    %210 = arith.negf %209 : vector<1x32xf32>
    %211 = math.exp %210 : vector<1x32xf32>
    %cst_48 = arith.constant 1.000000e+00 : f32
    %212 = vector.broadcast %cst_48 : f32 to vector<1x32xf32>
    %213 = arith.addf %212, %211 : vector<1x32xf32>
    %214 = arith.divf %212, %213 : vector<1x32xf32>
    %215 = arith.mulf %206, %187 : vector<1x32xf32>
    %216 = arith.mulf %200, %208 : vector<1x32xf32>
    %217 = arith.addf %215, %216 : vector<1x32xf32>
    %218 = math.tanh %217 : vector<1x32xf32>
    %219 = arith.mulf %214, %218 : vector<1x32xf32>
    %220 = arith.truncf %219 : vector<1x32xf32> to vector<1x32xbf16>
    %c6 = arith.constant 6 : index
    %c0_49 = arith.constant 0 : index
    %221 = vector.load %arg8[%c6, %c0_49] : memref<8x32xbf16, #tpu.memory_space<vmem>>, vector<1x32xbf16>
    tpu.vector_store %arg8[%c6, %c0_49], %220 {strides = array<i32>} : memref<8x32xbf16, #tpu.memory_space<vmem>>, vector<1x32xbf16>,
    %222 = vector.extract_strided_slice %9 {offsets = [7, 0], sizes = [1, 128], strides = [1, 1]} : vector<8x128xf32> to vector<1x128xf32>
    %cst_50 = arith.constant dense<0.000000e+00> : vector<1x128xf32>
    %223 = tpu.matmul %220, %0, %cst_50 {dimension_numbers = #tpu.dot_dimension_numbers<[1], [0], [0], [1], [0, 0, 1, 1], [], []>} : vector<1x32xbf16>, vector<32x128xbf16>, vector<1x128xf32> -> vector<1x128xf32>
    %224 = arith.addf %222, %223 : vector<1x128xf32>
    %225 = vector.extract_strided_slice %224 {offsets = [0, 0], sizes = [1, 32], strides = [1, 1]} : vector<1x128xf32> to vector<1x32xf32>
    %226 = arith.negf %225 : vector<1x32xf32>
    %227 = math.exp %226 : vector<1x32xf32>
    %cst_51 = arith.constant 1.000000e+00 : f32
    %228 = vector.broadcast %cst_51 : f32 to vector<1x32xf32>
    %229 = arith.addf %228, %227 : vector<1x32xf32>
    %230 = arith.divf %228, %229 : vector<1x32xf32>
    %231 = vector.extract_strided_slice %224 {offsets = [0, 32], sizes = [1, 32], strides = [1, 1]} : vector<1x128xf32> to vector<1x32xf32>
    %232 = arith.negf %231 : vector<1x32xf32>
    %233 = math.exp %232 : vector<1x32xf32>
    %cst_52 = arith.constant 1.000000e+00 : f32
    %234 = vector.broadcast %cst_52 : f32 to vector<1x32xf32>
    %235 = arith.addf %234, %233 : vector<1x32xf32>
    %236 = arith.divf %234, %235 : vector<1x32xf32>
    %237 = vector.extract_strided_slice %224 {offsets = [0, 64], sizes = [1, 32], strides = [1, 1]} : vector<1x128xf32> to vector<1x32xf32>
    %238 = math.tanh %237 : vector<1x32xf32>
    %239 = vector.extract_strided_slice %224 {offsets = [0, 96], sizes = [1, 32], strides = [1, 1]} : vector<1x128xf32> to vector<1x32xf32>
    %240 = arith.negf %239 : vector<1x32xf32>
    %241 = math.exp %240 : vector<1x32xf32>
    %cst_53 = arith.constant 1.000000e+00 : f32
    %242 = vector.broadcast %cst_53 : f32 to vector<1x32xf32>
    %243 = arith.addf %242, %241 : vector<1x32xf32>
    %244 = arith.divf %242, %243 : vector<1x32xf32>
    %245 = arith.mulf %236, %217 : vector<1x32xf32>
    %246 = arith.mulf %230, %238 : vector<1x32xf32>
    %247 = arith.addf %245, %246 : vector<1x32xf32>
    %248 = math.tanh %247 : vector<1x32xf32>
    %249 = arith.mulf %244, %248 : vector<1x32xf32>
    %250 = arith.truncf %249 : vector<1x32xf32> to vector<1x32xbf16>
    %c7 = arith.constant 7 : index
    %c0_54 = arith.constant 0 : index
    %251 = vector.load %arg8[%c7, %c0_54] : memref<8x32xbf16, #tpu.memory_space<vmem>>, vector<1x32xbf16>
    tpu.vector_store %arg8[%c7, %c0_54], %250 {strides = array<i32>} : memref<8x32xbf16, #tpu.memory_space<vmem>>, vector<1x32xbf16>,
    %c0_55 = arith.constant 0 : index
    %c0_56 = arith.constant 0 : index
    %252 = vector.load %arg8[%c0_55, %c0_56] : memref<8x32xbf16, #tpu.memory_space<vmem>>, vector<8x32xbf16>
    %cst_57 = arith.constant dense<0.000000e+00> : vector<8x8xf32>
    %253 = tpu.matmul %252, %1, %cst_57 {dimension_numbers = #tpu.dot_dimension_numbers<[1], [0], [0], [1], [0, 0, 1, 1], [], []>} : vector<8x32xbf16>, vector<32x8xbf16>, vector<8x8xf32> -> vector<8x8xf32>
    %254 = vector.broadcast %2 : vector<1x8xf32> to vector<8x8xf32>
    %255 = arith.addf %253, %254 : vector<8x8xf32>
    %cst_58 = arith.constant dense<0xFF800000> : vector<8xf32>
    %256 = vector.multi_reduction <maximumf>, %255, %cst_58 [1] : vector<8x8xf32> to vector<8xf32>
    %257 = vector.shape_cast %256 : vector<8xf32> to vector<8x1xf32>
    %258 = vector.broadcast %257 : vector<8x1xf32> to vector<8x8xf32>
    %259 = arith.subf %255, %258 : vector<8x8xf32>
    %260 = math.exp %259 : vector<8x8xf32>
    %cst_59 = arith.constant dense<0.000000e+00> : vector<8xf32>
    %261 = vector.multi_reduction <add>, %260, %cst_59 [1] : vector<8x8xf32> to vector<8xf32>
    %262 = vector.shape_cast %261 : vector<8xf32> to vector<8x1xf32>
    %263 = math.log %262 : vector<8x1xf32>
    %264 = vector.broadcast %263 : vector<8x1xf32> to vector<8x8xf32>
    %265 = arith.subf %259, %264 : vector<8x8xf32>
    %c0_60 = arith.constant 0 : index
    %c0_61 = arith.constant 0 : index
    %c0_62 = arith.constant 0 : index
    %266 = vector.load %arg7[%c0_60, %c0_61, %c0_62] : memref<1x8x8xf32, #tpu.memory_space<vmem>>, vector<1x8x8xf32>
    %267 = vector.shape_cast %266 : vector<1x8x8xf32> to vector<8x8xf32>
    %268 = vector.shape_cast %265 : vector<8x8xf32> to vector<1x8x8xf32>
    tpu.vector_store %arg7[%c0_60, %c0_61, %c0_62], %268 {strides = array<i32>} : memref<1x8x8xf32, #tpu.memory_space<vmem>>, vector<1x8x8xf32>,
    return
  }
  func.func @transform_0(%arg0: i32) -> (i32, i32, i32) {
    %c0_i32 = arith.constant 0 : i32
    %c0_i32_0 = arith.constant 0 : i32
    %c0_i32_1 = arith.constant 0 : i32
    return %arg0, %c0_i32, %c0_i32_0 : i32, i32, i32
  }
  func.func @transform_1(%arg0: i32) -> (i32, i32) {
    %c0_i32 = arith.constant 0 : i32
    %c0_i32_0 = arith.constant 0 : i32
    %c0_i32_1 = arith.constant 0 : i32
    return %c0_i32, %c0_i32_0 : i32, i32
  }
  func.func @transform_2(%arg0: i32) -> (i32, i32) {
    %c0_i32 = arith.constant 0 : i32
    %c0_i32_0 = arith.constant 0 : i32
    %c0_i32_1 = arith.constant 0 : i32
    return %c0_i32, %c0_i32_0 : i32, i32
  }
  func.func @transform_3(%arg0: i32) -> (i32, i32) {
    %c0_i32 = arith.constant 0 : i32
    %c0_i32_0 = arith.constant 0 : i32
    %c0_i32_1 = arith.constant 0 : i32
    return %c0_i32, %c0_i32_0 : i32, i32
  }
  func.func @transform_4(%arg0: i32) -> (i32, i32) {
    %c0_i32 = arith.constant 0 : i32
    %c0_i32_0 = arith.constant 0 : i32
    %c0_i32_1 = arith.constant 0 : i32
    return %c0_i32, %c0_i32_0 : i32, i32
  }
  func.func @transform_5(%arg0: i32) -> (i32, i32) {
    %c0_i32 = arith.constant 0 : i32
    %c0_i32_0 = arith.constant 0 : i32
    %c0_i32_1 = arith.constant 0 : i32
    return %c0_i32, %c0_i32_0 : i32, i32
  }
  func.func @transform_6(%arg0: i32) -> (i32, i32, i32) {
    %c0_i32 = arith.constant 0 : i32
    %c0_i32_0 = arith.constant 0 : i32
    %c0_i32_1 = arith.constant 0 : i32
    return %arg0, %c0_i32, %c0_i32_0 : i32, i32, i32
  }
}

</mosaic_0001>

<bundles_post_ra>
// kernel: net_forward.1
= control target key start
LH: loop header
LB: loop body
LE: loop exit
PB: predicated region body
PF: predicated region fallthrough
CT: control target
= control target key end

     0   :  { %s1475_s21 = smov 0   ;;  %s1669_s0 = inlined_call_operand.vmem [shape: bf16[2,8,32], index: 0, kind: input, shape index: {}]   ;;  %s1670_s1 = inlined_call_operand.vmem [shape: bf16[32,128], index: 1, kind: input, shape index: {}]   ;;  %s1671_s2 = inlined_call_operand.vmem [shape: bf16[32,128], index: 2, kind: input, shape index: {}]   ;;  %s1672_s3 = inlined_call_operand.vmem [shape: f32[1,128], index: 3, kind: input, shape index: {}]   ;;  %s1673_s4 = inlined_call_operand.vmem [shape: bf16[32,8], index: 4, kind: input, shape index: {}]   ;;  %s1674_s5 = inlined_call_operand.vmem [shape: f32[1,8], index: 5, kind: input, shape index: {}]   ;;  %s1675_s6 = inlined_call_operand.vmem [shape: f32[2,8,8], index: 6, kind: output, shape index: {}]  }
   0x1 LB: > { %s1180_s22 = sadd.s32 4294967295, %s1433_s21   ;;  %p1184_p0 = scmp.ge.s32.totalorder %s1433_s21, 1  ;;  %s1433_s21 = sphi %s1475_s21, %s16_s21  }
   0x2   : > { %p211_p1 = scmp.lt.s32.totalorder %s1433_s21, 3 }
   0x4   : > { %p212_p2 = pnand %p1184_p0, %p211_p1 }
   0x5   : > { %p239_p3 = scmp.lt.s32.totalorder (!%p212_p2), %s1180_s22, 1  ;;  %s1438_s13 = smov (!%p212_p2), 64  }
   0x6   : > { %215 = sbr.rel (%p212_p2) target bundleno = 6099 (0x17d3), region = 44  ;;  %s1439_s14 = smov (!%p212_p2), 32  }
   0xb   : > { %v1353_v0 = vld [vmem:[%s1670_s1 + $0x8] sm:$0xff]   ;;  %v1435_v1 = vmov 0.0   ;;  %v1355_v3 = vld [vmem:[%s1670_s1] sm:$0xff]   ;;  %vm1436_vm0 = vmmov 0   ;;  %s1677_s22 = smov (!%p239_p3, %s1180_s22), 1  ;;  %vm281_vm1 = vcmask 261120  }
   0xc   : > { %1260 = vmatprep.subr.bf16.mxu0 %v1435_v1  ;;  %1268 = vmatprep.subr.bf16.mxu1 %v1435_v1  ;;  %v1491_v2 = vld [vmem:[%s1671_s2 + $0x8] sm:$0xff]   ;;  %v1503_v4 = vld [vmem:[%s1671_s2] sm:$0xff]   ;;  %s1185_s7 = sshll.u32 %s1677_s22, 2  ;;  %v1437_v6 = vmov 0   ;;  %vm412_vm2 = vcmask 253952   ;;  %vm774_vm5 = vcmask 256002  }
   0xd   : > { %1261 = vmatpush3.bf16.msra.mxu0 %v1353_v0  ;;  %1264 = vmatprep.mubr.msk.bf16.mxu0 %vm1436_vm0, %v1435_v1  ;;  %s242_s10 = scalar_lea.vmem %s1669_s0, %s1185_s7  ;;  %v1187_v7 = vld [vmem:[%s1672_s3] ss:$0 sm:$0xff]  ;;  %vm413_vm3 = vsmask.f32 256  ;;  %vm775_vm6 = vsmask.f32 2304 }
   0xe   : > { %1269 = vmatpush3.bf16.msra.mxu1 %v1491_v2  ;;  %1262 = vmatprep.subr.bf16.mxu0 %v1435_v1  ;;  %v258_v5 = vld [vmem:[%s242_s10] sm:$0xf]  ;;  %vm414_vm4 = vmand %vm412_vm2, %vm413_vm3  ;;  %vm501_vm8 = vsmask.f32 7938  ;;  %vm864_vm10 = vsmask.f32 7946 }
   0xf   : > { %1270 = vmatprep.subr.bf16.mxu1 %v1435_v1  ;;  %1272 = vmatprep.mubr.msk.bf16.mxu1 %vm1436_vm0, %v1435_v1  ;;  %vm776_vm7 = vmand %vm774_vm5, %vm775_vm6  ;;  %vm592_vm12 = vcmask 254977   ;;  %vm593_vm13 = vsmask.f32 1280  ;;  %vm956_vm15 = vcmask 257027   ;;  %vm682_vm3 = vsmask.f32 7942 }
  0x10   : > { %vm502_vm9 = vmand %vm412_vm2, %vm501_vm8  ;;  %s1186_s23 = sshll.u32 %s1677_s22, 3 }
  0x11   : > { %1263 = vmatpush3.bf16.msra.mxu0 %v1355_v3  ;;  %vm865_vm11 = vmand %vm774_vm5, %vm864_vm10  ;;  %vm1046_vm5 = vsmask.f32 7950  ;;  %s246_s26 = scalar_lea.vmem %s1675_s6, %s1186_s23 }
  0x12   : > { %1271 = vmatpush3.bf16.msra.mxu1 %v1503_v4  ;;  %1276 = vmatprep.subr.bf16.mxu0 %v1435_v1  ;;  %vm594_vm14 = vmand %vm592_vm12, %vm593_vm13 }
  0x13   : > { %1284 = vmatprep.subr.bf16.mxu1 %v1435_v1  ;;  %vm1047_vm6 = vmand %vm956_vm15, %vm1046_vm5 }
  0x14   : > { %1265 = vmatmul.mubr.msk.bf16.vlgmr.msra.gmra.mxu0 %vm281_vm1, %v258_v5 }
  0x15   : > { %1273 = vmatmul.mubr.bf16.vlgmr.msra.gmra.mxu1 %v1437_v6  ;;  %1277 = vmatpush3.bf16.msra.mxu0 %v1491_v2 }
  0x16   : > { %1278 = vmatprep.subr.bf16.mxu0 %v1435_v1  ;;  %1280 = vmatprep.mubr.msk.bf16.mxu0 %vm1436_vm0, %v1435_v1 }
  0x17   : > { %1285 = vmatpush3.bf16.msra.mxu1 %v1491_v2  ;;  %1288 = vmatprep.mubr.msk.bf16.mxu1 %vm1436_vm0, %v1435_v1 }
  0x18   : > { %1286 = vmatprep.subr.bf16.mxu1 %v1435_v1 }
  0x19   : > { %1279 = vmatpush3.bf16.msra.mxu0 %v1503_v4 }
  0x1a   : > { %1292 = vmatprep.subr.bf16.mxu0 %v1435_v1 }
  0x1b   : > { %1287 = vmatpush3.bf16.msra.mxu1 %v1503_v4 }
  0x1c   : > { %1300 = vmatprep.subr.bf16.mxu1 %v1435_v1 }
  0xd4   : > { %v319_v8 = vpop.f32.mrf.mxu0 }
  0xd5   : > { %v1533_v9 = vadd.f32 %v1187_v7, %v319_v8  ;;  %v374_v10 = vpop.f32.mrf.mxu1 }
  0xd6   : > { %v1266_v11 = vpop.f32.mrf.mxu0 }
  0xd7   : > { %v380_v12 = vadd.f32 %v374_v10, %v1533_v9  ;;  %v1274_v13 = vpop.f32.mrf.mxu1 }
  0xd8   : > { %v322_v14 = vpop.f32.mrf.mxu0 }
  0xd9   : > { %1359 = vtanh.f32 %v380_v12  ;;  %v377_v15 = vpop.f32.mrf.mxu1  ;;  %v1193_v19 = vmul.f32 -1.442695, %v380_v12 }
  0xda   : > { %v1267_v16 = vpop.f32.mrf.mxu0 }
  0xdb   : > { %v1275_v17 = vpop.f32.mrf.mxu1  ;;  %1361 = vpow2.f32 %v1193_v19 }
  0xe6   : > { %v1360_v18 = vpop.eup %1359 }
  0xe7   : > { %390 = vrot.lane.b32.xlu0 %v1360_v18, %s1438_s13 }
  0xe8   : > { %v1362_v20 = vpop.eup %1361 }
  0xe9   : > { %v384_v21 = vadd.f32 1.0, %v1362_v20 }
  0xeb   : > { %1363 = vrcp.f32 %v384_v21 }
  0xf8   : > { %v1364_v22 = vpop.eup %1363 }
  0xf9   : > { %v388_v25 = vmul.f32 0.0, %v1364_v22 }
 0x159   : > { %v391_v23 = vpop.permute.xlu0 %390 }
 0x15a   : > { %v393_v24 = vmul.f32 %v1364_v22, %v391_v23 }
 0x15c   : > { %395 = vrot.lane.b32.xlu0 %v393_v24, %s1439_s14 }
 0x1ce   : > { %v396_v26 = vpop.permute.xlu0 %395 }
 0x1cf   : > { %v398_v27 = vadd.f32 %v396_v26, %v388_v25 }
 0x1d1   : > { %1365 = vtanh.f32 %v398_v27  ;;  %v475_v46 = vrot.slane %v398_v27, 7 }
 0x1de   : > { %v1366_v28 = vpop.eup %1365 }
 0x1df   : > { %401 = vrot.lane.b32.xlu1 %v1366_v28, %s1438_s13 }
 0x251   : > { %v402_v29 = vpop.permute.xlu1 %401 }
 0x252   : > { %v404_v30 = vmul.f32 %v1364_v22, %v402_v29 }
 0x254   : > { %v1539_v31 = vpack.c.bf16 %v404_v30, %v404_v30 }
 0x256   : > { %418 = vrot.lane.b32.xlu1 %v1539_v31, %s1439_s14 }
 0x2c8   : > { %v419_v32 = vpop.permute.xlu1 %418 }
 0x2c9   : > { %1281 = vmatmul.mubr.msk.bf16.vlgmr.msra.gmra.mxu0 %vm281_vm1, %v419_v32 }
 0x2ca   : > { %1293 = vmatpush3.bf16.msra.mxu0 %v1491_v2  ;;  %1296 = vmatprep.mubr.msk.bf16.mxu0 %vm1436_vm0, %v1435_v1 }
 0x2cb   : > { %1294 = vmatprep.subr.bf16.mxu0 %v1435_v1 }
 0x2ce   : > { %1295 = vmatpush3.bf16.msra.mxu0 %v1503_v4 }
 0x2cf   : > { %1308 = vmatprep.subr.bf16.mxu0 %v1435_v1 }
 0x389   : > { %v457_v33 = vpop.f32.mrf.mxu0 }
 0x38a   : > { %v464_v34 = vrot.slane %v457_v33, 7 }
 0x38b   : > { %v1282_v35 = vpop.f32.mrf.mxu0 }
 0x38c   : > { %v466_v36 = vadd.f32 %v464_v34, %v1533_v9 }
 0x38d   : > { %v460_v37 = vpop.f32.mrf.mxu0 }
 0x38e   : > { %1367 = vtanh.f32 %v466_v36  ;;  %v1196_v40 = vmul.f32 -1.442695, %v466_v36 }
 0x38f   : > { %v1283_v38 = vpop.f32.mrf.mxu0 }
 0x390   : > { %1369 = vpow2.f32 %v1196_v40 }
 0x39b   : > { %v1368_v39 = vpop.eup %1367 }
 0x39c   : > { %479 = vrot.lane.b32.xlu0 %v1368_v39, %s1438_s13 }
 0x39d   : > { %v1370_v41 = vpop.eup %1369 }
 0x39e   : > { %v470_v42 = vadd.f32 1.0, %v1370_v41 }
 0x3a0   : > { %1371 = vrcp.f32 %v470_v42 }
 0x3ad   : > { %v1372_v43 = vpop.eup %1371 }
 0x3ae   : > { %v477_v47 = vmul.f32 %v1372_v43, %v475_v46 }
 0x40e   : > { %v480_v44 = vpop.permute.xlu0 %479 }
 0x40f   : > { %v482_v45 = vmul.f32 %v1372_v43, %v480_v44 }
 0x411   : > { %484 = vrot.lane.b32.xlu1 %v482_v45, %s1439_s14 }
 0x483   : > { %v485_v48 = vpop.permute.xlu1 %484 }
 0x484   : > { %v487_v49 = vadd.f32 %v485_v48, %v477_v47 }
 0x486   : > { %1373 = vtanh.f32 %v487_v49  ;;  %v566_v8 = vrot.slane %v487_v49, 7 }
 0x493   : > { %v1374_v50 = vpop.eup %1373 }
 0x494   : > { %490 = vrot.lane.b32.xlu0 %v1374_v50, %s1438_s13 }
 0x506   : > { %v491_v51 = vpop.permute.xlu0 %490 }
 0x507   : > { %v493_v52 = vmul.f32 %v1372_v43, %v491_v51 }
 0x509   : > { %v1554_v53 = vpack.c.bf16 %v493_v52, %v493_v52 }
 0x50b   : > { %v507_v54 = vshrl.u32 %v1554_v53, 16 }
 0x50d   : > { %509 = vrot.lane.b32.xlu1 %v507_v54, %s1439_s14 }
 0x57f   : > { %v510_v55 = vpop.permute.xlu1 %509 }
 0x580   : > { %1289 = vmatmul.mubr.msk.bf16.vlgmr.msra.gmra.mxu1 %vm281_vm1, %v510_v55 }
 0x581   : > { %1301 = vmatpush3.bf16.msra.mxu1 %v1491_v2  ;;  %1304 = vmatprep.mubr.msk.bf16.mxu1 %vm1436_vm0, %v1435_v1 }
 0x582   : > { %1302 = vmatprep.subr.bf16.mxu1 %v1435_v1 }
 0x585   : > { %1303 = vmatpush3.bf16.msra.mxu1 %v1503_v4 }
 0x586   : > { %1316 = vmatprep.subr.bf16.mxu1 %v1435_v1 }
 0x640   : > { %v548_v56 = vpop.f32.mrf.mxu1 }
 0x641   : > { %v555_v57 = vrot.slane %v548_v56, 6 }
 0x642   : > { %v1290_v58 = vpop.f32.mrf.mxu1 }
 0x643   : > { %v557_v59 = vadd.f32 %v555_v57, %v1533_v9 }
 0x644   : > { %v551_v60 = vpop.f32.mrf.mxu1 }
 0x645   : > { %1375 = vtanh.f32 %v557_v59  ;;  %v1199_v63 = vmul.f32 -1.442695, %v557_v59 }
 0x646   : > { %v1291_v61 = vpop.f32.mrf.mxu1 }
 0x647   : > { %1377 = vpow2.f32 %v1199_v63 }
 0x652   : > { %v1376_v62 = vpop.eup %1375 }
 0x653   : > { %570 = vrot.lane.b32.xlu0 %v1376_v62, %s1438_s13 }
 0x654   : > { %v1378_v0 = vpop.eup %1377 }
 0x655   : > { %v561_v3 = vadd.f32 1.0, %v1378_v0 }
 0x657   : > { %1379 = vrcp.f32 %v561_v3 }
 0x664   : > { %v1380_v5 = vpop.eup %1379 }
 0x665   : > { %v568_v10 = vmul.f32 %v1380_v5, %v566_v8 }
 0x6c5   : > { %v571_v6 = vpop.permute.xlu0 %570 }
 0x6c6   : > { %v573_v7 = vmul.f32 %v1380_v5, %v571_v6 }
 0x6c8   : > { %575 = vrot.lane.b32.xlu1 %v573_v7, %s1439_s14 }
 0x73a   : > { %v576_v11 = vpop.permute.xlu1 %575 }
 0x73b   : > { %v578_v12 = vadd.f32 %v576_v11, %v568_v10 }
 0x73d   : > { %1381 = vtanh.f32 %v578_v12  ;;  %v656_v33 = vrot.slane %v578_v12, 7 }
 0x74a   : > { %v1382_v13 = vpop.eup %1381 }
 0x74b   : > { %581 = vrot.lane.b32.xlu0 %v1382_v13, %s1438_s13 }
 0x7bd   : > { %v582_v14 = vpop.permute.xlu0 %581 }
 0x7be   : > { %v584_v15 = vmul.f32 %v1380_v5, %v582_v14 }
 0x7c0   : > { %v1569_v16 = vpack.c.bf16 %v584_v15, %v584_v15 }
 0x7c2   : > { %v598_v17 = vrot.slane %v1569_v16, 1 }
 0x7c4   : > { %599 = vrot.lane.b32.xlu1 %v598_v17, %s1439_s14 }
 0x836   : > { %v600_v18 = vpop.permute.xlu1 %599 }
 0x837   : > { %1297 = vmatmul.mubr.msk.bf16.vlgmr.msra.gmra.mxu0 %vm281_vm1, %v600_v18 }
 0x838   : > { %1309 = vmatpush3.bf16.msra.mxu0 %v1491_v2  ;;  %1312 = vmatprep.mubr.msk.bf16.mxu0 %vm1436_vm0, %v1435_v1 }
 0x839   : > { %1310 = vmatprep.subr.bf16.mxu0 %v1435_v1 }
 0x83c   : > { %1311 = vmatpush3.bf16.msra.mxu0 %v1503_v4 }
 0x83d   : > { %1324 = vmatprep.subr.bf16.mxu0 %v1435_v1 }
 0x8f7   : > { %v638_v19 = vpop.f32.mrf.mxu0 }
 0x8f8   : > { %v645_v20 = vrot.slane %v638_v19, 5 }
 0x8f9   : > { %v1298_v21 = vpop.f32.mrf.mxu0 }
 0x8fa   : > { %v647_v22 = vadd.f32 %v645_v20, %v1533_v9 }
 0x8fb   : > { %v641_v23 = vpop.f32.mrf.mxu0 }
 0x8fc   : > { %1383 = vtanh.f32 %v647_v22  ;;  %v1202_v26 = vmul.f32 -1.442695, %v647_v22 }
 0x8fd   : > { %v1299_v24 = vpop.f32.mrf.mxu0 }
 0x8fe   : > { %1385 = vpow2.f32 %v1202_v26 }
 0x909   : > { %v1384_v25 = vpop.eup %1383 }
 0x90a   : > { %660 = vrot.lane.b32.xlu0 %v1384_v25, %s1438_s13 }
 0x90b   : > { %v1386_v27 = vpop.eup %1385 }
 0x90c   : > { %v651_v28 = vadd.f32 1.0, %v1386_v27 }
 0x90e   : > { %1387 = vrcp.f32 %v651_v28 }
 0x91b   : > { %v1388_v29 = vpop.eup %1387 }
 0x91c   : > { %v658_v34 = vmul.f32 %v1388_v29, %v656_v33 }
 0x97c   : > { %v661_v30 = vpop.permute.xlu0 %660 }
 0x97d   : > { %v663_v32 = vmul.f32 %v1388_v29, %v661_v30 }
 0x97f   : > { %665 = vrot.lane.b32.xlu1 %v663_v32, %s1439_s14 }
 0x9f1   : > { %v666_v35 = vpop.permute.xlu1 %665 }
 0x9f2   : > { %v668_v36 = vadd.f32 %v666_v35, %v658_v34 }
 0x9f4   : > { %1389 = vtanh.f32 %v668_v36  ;;  %v748_v58 = vrot.slane %v668_v36, 7 }
 0xa01   : > { %v1390_v37 = vpop.eup %1389 }
 0xa02   : > { %671 = vrot.lane.b32.xlu0 %v1390_v37, %s1438_s13 }
 0xa74   : > { %v672_v38 = vpop.permute.xlu0 %671 }
 0xa75   : > { %v674_v39 = vmul.f32 %v1388_v29, %v672_v38 }
 0xa77   : > { %v1584_v40 = vpack.c.bf16 %v674_v39, %v674_v39 }
 0xa79   : > { %v688_v41 = vshrl.u32 %v1584_v40, 16 }
 0xa7b   : > { %v690_v42 = vrot.slane %v688_v41, 1 }
 0xa7d   : > { %691 = vrot.lane.b32.xlu1 %v690_v42, %s1439_s14 }
 0xaef   : > { %v692_v43 = vpop.permute.xlu1 %691 }
 0xaf0   : > { %1305 = vmatmul.mubr.msk.bf16.vlgmr.msra.gmra.mxu1 %vm281_vm1, %v692_v43 }
 0xaf1   : > { %1317 = vmatpush3.bf16.msra.mxu1 %v1491_v2  ;;  %1320 = vmatprep.mubr.msk.bf16.mxu1 %vm1436_vm0, %v1435_v1 }
 0xaf2   : > { %1318 = vmatprep.subr.bf16.mxu1 %v1435_v1 }
 0xaf5   : > { %1319 = vmatpush3.bf16.msra.mxu1 %v1503_v4 }
 0xaf6   : > { %1332 = vmatprep.subr.bf16.mxu1 %v1435_v1 }
 0xbb0   : > { %v730_v44 = vpop.f32.mrf.mxu1 }
 0xbb1   : > { %v737_v45 = vrot.slane %v730_v44, 4 }
 0xbb2   : > { %v1306_v46 = vpop.f32.mrf.mxu1 }
 0xbb3   : > { %v739_v47 = vadd.f32 %v737_v45, %v1533_v9 }
 0xbb4   : > { %v733_v48 = vpop.f32.mrf.mxu1 }
 0xbb5   : > { %1391 = vtanh.f32 %v739_v47  ;;  %v1205_v51 = vmul.f32 -1.442695, %v739_v47 }
 0xbb6   : > { %v1307_v49 = vpop.f32.mrf.mxu1 }
 0xbb7   : > { %1393 = vpow2.f32 %v1205_v51 }
 0xbc2   : > { %v1392_v50 = vpop.eup %1391 }
 0xbc3   : > { %752 = vrot.lane.b32.xlu0 %v1392_v50, %s1438_s13 }
 0xbc4   : > { %v1394_v52 = vpop.eup %1393 }
 0xbc5   : > { %v743_v54 = vadd.f32 1.0, %v1394_v52 }
 0xbc7   : > { %1395 = vrcp.f32 %v743_v54 }
 0xbd4   : > { %v1396_v55 = vpop.eup %1395 }
 0xbd5   : > { %v750_v59 = vmul.f32 %v1396_v55, %v748_v58 }
 0xc35   : > { %v753_v56 = vpop.permute.xlu0 %752 }
 0xc36   : > { %v755_v57 = vmul.f32 %v1396_v55, %v753_v56 }
 0xc38   : > { %757 = vrot.lane.b32.xlu1 %v755_v57, %s1439_s14 }
 0xcaa   : > { %v758_v60 = vpop.permute.xlu1 %757 }
 0xcab   : > { %v760_v61 = vadd.f32 %v758_v60, %v750_v59 }
 0xcad   : > { %1397 = vtanh.f32 %v760_v61 }
 0xcba   : > { %v1398_v62 = vpop.eup %1397 }
 0xcbb   : > { %763 = vrot.lane.b32.xlu0 %v1398_v62, %s1438_s13 }
 0xd2d   : > { %v764_v63 = vpop.permute.xlu0 %763 }
 0xd2e   : > { %v766_v0 = vmul.f32 %v1396_v55, %v764_v63 }
 0xd30   : > { %v1599_v3 = vpack.c.bf16 %v766_v0, %v766_v0 }
 0xd32   : > { %v780_v5 = vrot.slane %v1599_v3, 2 }
 0xd34   : > { %781 = vrot.lane.b32.xlu1 %v780_v5, %s1439_s14 }
 0xda6   : > { %v782_v6 = vpop.permute.xlu1 %781 }
 0xda7   : > { %1313 = vmatmul.mubr.msk.bf16.vlgmr.msra.gmra.mxu0 %vm281_vm1, %v782_v6 }
 0xda8   : > { %1325 = vmatpush3.bf16.msra.mxu0 %v1491_v2  ;;  %1328 = vmatprep.mubr.msk.bf16.mxu0 %vm1436_vm0, %v1435_v1 }
 0xda9   : > { %1326 = vmatprep.subr.bf16.mxu0 %v1435_v1 }
 0xdac   : > { %1327 = vmatpush3.bf16.msra.mxu0 %v1503_v4  ;;  %v838_v4 = vrot.slane %v760_v61, 7 }
 0xe67   : > { %v820_v7 = vpop.f32.mrf.mxu0 }
 0xe68   : > { %v827_v8 = vrot.slane %v820_v7, 3 }
 0xe69   : > { %v1314_v10 = vpop.f32.mrf.mxu0 }
 0xe6a   : > { %v829_v11 = vadd.f32 %v827_v8, %v1533_v9 }
 0xe6b   : > { %v823_v12 = vpop.f32.mrf.mxu0 }
 0xe6c   : > { %1399 = vtanh.f32 %v829_v11  ;;  %v1208_v15 = vmul.f32 -1.442695, %v829_v11 }
 0xe6d   : > { %v1315_v13 = vpop.f32.mrf.mxu0 }
 0xe6e   : > { %1401 = vpow2.f32 %v1208_v15 }
 0xe79   : > { %v1400_v14 = vpop.eup %1399 }
 0xe7a   : > { %842 = vrot.lane.b32.xlu0 %v1400_v14, %s1438_s13  ;;  %v415_v14 = vld [vmem:[#allocation2] sm:$0x1] }
 0xe7b   : > { %v1402_v2 = vpop.eup %1401 }
 0xe7c   : > { %v833_v17 = vadd.f32 1.0, %v1402_v2 }
 0xe7e   : > { %1403 = vrcp.f32 %v833_v17 }
 0xe8b   : > { %v1404_v18 = vpop.eup %1403 }
 0xe8c   : > { %v840_v21 = vmul.f32 %v1404_v18, %v838_v4 }
 0xeec   : > { %v843_v19 = vpop.permute.xlu0 %842 }
 0xeed   : > { %v845_v20 = vmul.f32 %v1404_v18, %v843_v19 }
 0xeef   : > { %847 = vrot.lane.b32.xlu1 %v845_v20, %s1439_s14 }
 0xf61   : > { %v848_v22 = vpop.permute.xlu1 %847 }
 0xf62   : > { %v850_v23 = vadd.f32 %v848_v22, %v840_v21 }
 0xf64   : > { %1405 = vtanh.f32 %v850_v23  ;;  %v930_v46 = vrot.slane %v850_v23, 7  ;;  %v1357_v23 = vld [vmem:[%s1673_s4 + $0x8] sm:$0xff]  }
 0xf71   : > { %v1406_v24 = vpop.eup %1405 }
 0xf72   : > { %853 = vrot.lane.b32.xlu0 %v1406_v24, %s1438_s13  ;;  %v1358_v24 = vld [vmem:[%s1673_s4] sm:$0xff]  }
 0xfe4   : > { %v854_v25 = vpop.permute.xlu0 %853 }
 0xfe5   : > { %v856_v26 = vmul.f32 %v1404_v18, %v854_v25 }
 0xfe7   : > { %v857_v27 = vpack.c.bf16 %v856_v26, %v856_v26  ;;  %v595_v26 = vld [vmem:[#allocation2] sm:$0x2] }
 0xfe9   : > { %v870_v28 = vshrl.u32 %v857_v27, 16 }
 0xfeb   : > { %v872_v29 = vrot.slane %v870_v28, 2 }
 0xfed   : > { %873 = vrot.lane.b32.xlu1 %v872_v29, %s1439_s14  ;;  %v959_v29 = vld [vmem:[#allocation2] sm:$0x8] }
0x105f   : > { %v874_v30 = vpop.permute.xlu1 %873 }
0x1060   : > { %1321 = vmatmul.mubr.msk.bf16.vlgmr.msra.gmra.mxu1 %vm281_vm1, %v874_v30 }
0x1061   : > { %1336 = vmatprep.mubr.msk.bf16.mxu1 %vm1436_vm0, %v1435_v1  ;;  %1333 = vmatpush3.bf16.msra.mxu1 %v1357_v23  ;;  %vm957_vm0 = vsmask.f32 3328 }
0x1062   : > { %1334 = vmatprep.subr.bf16.mxu1 %v1435_v1  ;;  %vm958_vm2 = vmand %vm956_vm15, %vm957_vm0 }
0x1065   : > { %1335 = vmatpush3.bf16.msra.mxu1 %v1358_v24 }
0x1120   : > { %v912_v32 = vpop.f32.mrf.mxu1 }
0x1121   : > { %v919_v33 = vrot.slane %v912_v32, 2 }
0x1122   : > { %v1322_v34 = vpop.f32.mrf.mxu1 }
0x1123   : > { %v921_v35 = vadd.f32 %v919_v33, %v1533_v9 }
0x1124   : > { %v915_v36 = vpop.f32.mrf.mxu1 }
0x1125   : > { %1407 = vtanh.f32 %v921_v35  ;;  %v1211_v39 = vmul.f32 -1.442695, %v921_v35 }
0x1126   : > { %v1323_v37 = vpop.f32.mrf.mxu1 }
0x1127   : > { %1409 = vpow2.f32 %v1211_v39  ;;  %v1216_v39 = vld [vmem:[%s1674_s5] ss:$0 sm:$0xff] }
0x1132   : > { %v1408_v38 = vpop.eup %1407 }
0x1133   : > { %934 = vrot.lane.b32.xlu0 %v1408_v38, %s1438_s13 }
0x1134   : > { %v1410_v41 = vpop.eup %1409 }
0x1135   : > { %v925_v42 = vadd.f32 1.0, %v1410_v41 }
0x1137   : > { %1411 = vrcp.f32 %v925_v42 }
0x1144   : > { %v1412_v43 = vpop.eup %1411 }
0x1145   : > { %v932_v47 = vmul.f32 %v1412_v43, %v930_v46 }
0x11a5   : > { %v935_v44 = vpop.permute.xlu0 %934 }
0x11a6   : > { %v937_v45 = vmul.f32 %v1412_v43, %v935_v44 }
0x11a8   : > { %939 = vrot.lane.b32.xlu1 %v937_v45, %s1439_s14 }
0x121a   : > { %v940_v48 = vpop.permute.xlu1 %939 }
0x121b   : > { %v942_v49 = vadd.f32 %v940_v48, %v932_v47 }
0x121d   : > { %1413 = vtanh.f32 %v942_v49 }
0x122a   : > { %v1414_v50 = vpop.eup %1413 }
0x122b   : > { %945 = vrot.lane.b32.xlu0 %v1414_v50, %s1438_s13 }
0x129d   : > { %v946_v51 = vpop.permute.xlu0 %945 }
0x129e   : > { %v948_v52 = vmul.f32 %v1412_v43, %v946_v51 }
0x12a0   : > { %v949_v54 = vpack.c.bf16 %v948_v52, %v948_v52 }
0x12a2   : > { %v962_v55 = vrot.slane %v949_v54, 3 }
0x12a4   : > { %963 = vrot.lane.b32.xlu1 %v962_v55, %s1439_s14 }
0x1316   : > { %v964_v56 = vpop.permute.xlu1 %963 }
0x1317   : > { %1329 = vmatmul.mubr.msk.bf16.vlgmr.msra.gmra.mxu0 %vm281_vm1, %v964_v56 }
0x13d7   : > { %v1002_v57 = vpop.f32.mrf.mxu0 }
0x13d8   : > { %v1009_v58 = vrot.slane %v1002_v57, 1 }
0x13d9   : > { %v1330_v59 = vpop.f32.mrf.mxu0 }
0x13da   : > { %v1011_v60 = vadd.f32 %v1009_v58, %v1533_v9  ;;  %v1020_v9 = vrot.slane %v942_v49, 7 }
0x13db   : > { %v1005_v61 = vpop.f32.mrf.mxu0 }
0x13dc   : > { %1415 = vtanh.f32 %v1011_v60  ;;  %v1214_v0 = vmul.f32 -1.442695, %v1011_v60 }
0x13dd   : > { %v1331_v62 = vpop.f32.mrf.mxu0 }
0x13de   : > { %1417 = vpow2.f32 %v1214_v0 }
0x13e9   : > { %v1416_v63 = vpop.eup %1415 }
0x13ea   : > { %1024 = vrot.lane.b32.xlu0 %v1416_v63, %s1438_s13 }
0x13eb   : > { %v1418_v5 = vpop.eup %1417 }
0x13ec   : > { %v1015_v6 = vadd.f32 1.0, %v1418_v5 }
0x13ee   : > { %1419 = vrcp.f32 %v1015_v6 }
0x13fb   : > { %v1420_v7 = vpop.eup %1419 }
0x13fc   : > { %v1022_v11 = vmul.f32 %v1420_v7, %v1020_v9 }
0x145c   : > { %v1025_v8 = vpop.permute.xlu0 %1024 }
0x145d   : > { %v1027_v10 = vmul.f32 %v1420_v7, %v1025_v8 }
0x145f   : > { %1029 = vrot.lane.b32.xlu1 %v1027_v10, %s1439_s14 }
0x1463   : > { %409 = vrot.lane.b32.xlu1 %v1539_v31, %s1439_s14 }
0x1467   : > { %771 = vrot.lane.b32.xlu1 %v1599_v3, %s1439_s14 }
0x146b   : > { %498 = vrot.lane.b32.xlu1 %v1554_v53, %s1439_s14  ;;  %v777_v53 = vld [vmem:[#allocation2] sm:$0x4] }
0x146f   : > { %861 = vrot.lane.b32.xlu1 %v857_v27, %s1439_s14 }
0x14d1   : > { %v1030_v12 = vpop.permute.xlu1 %1029 }
0x14d2   : > { %v1032_v13 = vadd.f32 %v1030_v12, %v1022_v11 }
0x14d4   : > { %1421 = vtanh.f32 %v1032_v13 }
0x14d5   : > { %v410_v31 = vpop.permute.xlu1 %409 }
0x14d6   : > { %v416_v15 = vsel %vm414_vm4, %v410_v31, %v415_v14  ;;  %vm683_vm4 = vmand %vm592_vm12, %vm682_vm3 }
0x14d7   : > { %417 = vst [vmem:[#allocation2] sm:$0x1] %v416_v15 }
0x14d9   : > { %v772_v3 = vpop.permute.xlu1 %771 }
0x14da   : > { %v778_v2 = vsel %vm776_vm7, %v772_v3, %v777_v53  ;;  %vm1113_vm7 = vcmask 64512  }
0x14db   : > { %779 = vst [vmem:[#allocation2] sm:$0x4] %v778_v2 }
0x14dd   : > { %v499_v17 = vpop.permute.xlu1 %498 }
0x14de   : > { %v503_v18 = vld [vmem:[#allocation2] sm:$0x1] }
0x14df   : > { %v504_v19 = vsel %vm502_vm9, %v499_v17, %v503_v18 }
0x14e0   : > { %505 = vst [vmem:[#allocation2] sm:$0x1] %v504_v19 }
0x14e1   : > { %v1422_v20 = vpop.eup %1421  ;;  %v862_v4 = vpop.permute.xlu1 %861 }
0x14e2   : > { %v866_v21 = vld [vmem:[#allocation2] sm:$0x4]  ;;  %1035 = vrot.lane.b32.xlu0 %v1422_v20, %s1438_s13 }
0x14e3   : > { %v867_v22 = vsel %vm865_vm11, %v862_v4, %v866_v21 }
0x14e4   : > { %868 = vst [vmem:[#allocation2] sm:$0x4] %v867_v22 }
0x14e6   : > { %589 = vrot.lane.b32.xlu0 %v1569_v16, %s1439_s14 }
0x14ea   : > { %953 = vrot.lane.b32.xlu0 %v949_v54, %s1439_s14 }
0x14ee   : > { %679 = vrot.lane.b32.xlu0 %v1584_v40, %s1439_s14 }
0x1554   : > { %v1036_v16 = vpop.permute.xlu0 %1035 }
0x1555   : > { %v1038_v25 = vmul.f32 %v1420_v7, %v1036_v16 }
0x1557   : > { %v1229_v40 = vpack.c.bf16 %v1038_v25, %v1038_v25 }
0x1558   : > { %v590_v27 = vpop.permute.xlu0 %589 }
0x1559   : > { %v596_v28 = vsel %vm594_vm14, %v590_v27, %v595_v26  ;;  %1043 = vrot.lane.b32.xlu0 %v1229_v40, %s1439_s14 }
0x155a   : > { %597 = vst [vmem:[#allocation2] sm:$0x2] %v596_v28 }
0x155c   : > { %v954_v1 = vpop.permute.xlu0 %953 }
0x155d   : > { %v960_v30 = vsel %vm958_vm2, %v954_v1, %v959_v29 }
0x155e   : > { %961 = vst [vmem:[#allocation2] sm:$0x8] %v960_v30 }
0x1560   : > { %v680_v32 = vpop.permute.xlu0 %679 }
0x1561   : > { %v684_v33 = vld [vmem:[#allocation2] sm:$0x2] }
0x1562   : > { %v685_v34 = vsel %vm683_vm4, %v680_v32, %v684_v33 }
0x1563   : > { %686 = vst [vmem:[#allocation2] sm:$0x2] %v685_v34 }
0x1565   : > { %v1048_v35 = vld [vmem:[#allocation2] sm:$0x8] }
0x15cb   : > { %v1044_v36 = vpop.permute.xlu0 %1043 }
0x15cc   : > { %v1049_v37 = vsel %vm1047_vm6, %v1044_v36, %v1048_v35 }
0x15cd   : > { %1050 = vst [vmem:[#allocation2] sm:$0x8] %v1049_v37 }
0x15d4   : > { %v1051_v38 = vld [vmem:[#allocation2] sm:$0xf] }
0x15d5   : > { %1337 = vmatmul.mubr.msk.bf16.vlgmr.msra.gmra.mxu1 %vm281_vm1, %v1051_v38 }
0x1695   : > { %v1107_v41 = vpop.f32.mrf.mxu1 }
0x1696   : > { %v1108_v42 = vadd.f32 %v1216_v39, %v1107_v41 }
0x1697   : > { %v1338_v43 = vpop.f32.mrf.mxu1 }
0x1698   : > { %v1114_v44 = vsel %vm1113_vm7, %v1108_v42, -inf }
0x1699   : > { %1115 = vmax.xlane.f32.xlu1 %v1114_v44  ;;  %v1110_v45 = vpop.f32.mrf.mxu1 }
0x169b   : > { %v1339_v46 = vpop.f32.mrf.mxu1 }
0x1722   : > { %v1116_v47 = vpop.xlane.xlu1 %1115 }
0x1723   : > { %v1117_v48 = vsub.f32 %v1108_v42, %v1116_v47 }
0x1725   : > { %v1118_v49 = vmul.f32 1.442695, %v1117_v48 }
0x1727   : > { %1423 = vpow2.f32 %v1118_v49 }
0x1734   : > { %v1424_v50 = vpop.eup %1423 }
0x1735   : > { %v1120_v51 = vsel %vm1113_vm7, %v1424_v50, 0.0 }
0x1736   : > { %1121 = vadd.xlane.f32.xlu0 %v1120_v51 }
0x17bf   : > { %v1122_v52 = vpop.xlane.xlu0 %1121 }
0x17c0   : > { %1425 = vlog2.f32 %v1122_v52 }
0x17cd   : > { %v1426_v54 = vpop.eup %1425 }
0x17ce   : > { %v1124_v55 = vmul.f32 0.6931472, %v1426_v54 }
0x17d0   : > { %v1125_v56 = vsub.f32 %v1117_v48, %v1124_v55 }
0x17d2   : > { %1126 = vst.msk [vmem:[%s246_s26] sm:$0xff] %vm1113_vm7, %v1125_v56 }
0x17d3 PF: > { %s16_s21 = sadd.s32 1, %s1433_s21  }
0x17d4   : > { %p13_p4 = scmp.ge.s32.totalorder %s16_s21, 4  }
0x17d6   :  { %15 = sbr.rel (!%p13_p4) target bundleno = 1 (0x1), region = 74 }

</bundles_post_ra>
